<compile_context>
chip_gen: v5e
topology: v5e:2x2
jax: 0.10.0
libtpu: 0.0.40
codegen_flags: <defaults>
</compile_context>

<pallas_src>
import jax
import jax.numpy as jnp
from jax.experimental import pallas as pl
from jax.experimental.pallas import tpu as pltpu

# Logical (PyTorch) sizes.
N_FEATURES = 30        # load_breast_cancer() has 30 features
H1 = 64
H2 = 32
N_CLASSES = 2
N_HIDDEN_LAYERS = 10

# Padded, hardware-friendly sizes (lane dim = 128, sublane multiple of 8).
F_PAD = 128            # 30  -> 128 zero-padded contraction dim for fc1
H1_PAD = 128           # 64  -> 128 zero-padded hidden width (exact: ReLU(0)=0)
H2_PAD = 128           # 32  -> 128 zero-padded fc2 width
OUT_PAD = 128          # 2   -> 128 lane-dense output slab; sliced back outside


def _round_up(x, m):
    return (x + m - 1) // m * m


def mlp_kernel(x_ref, w1_ref, b1_ref, hw_ref, hb_ref,
               w2_ref, b2_ref, w3_ref, b3_ref, out_ref):
    # fc1 + relu: f32 operands (input precision), f32 accumulate.
    h = jnp.dot(x_ref[...], w1_ref[...], preferred_element_type=jnp.float32)
    h = jnp.maximum(h + b1_ref[...], 0.0)

    # 10 hidden Linear layers + relu, statically unrolled; bf16 MXU operands,
    # f32 accumulation, bias + ReLU in f32 on the VPU.
    for i in range(N_HIDDEN_LAYERS):
        h = jnp.dot(h.astype(jnp.bfloat16), hw_ref[i],
                    preferred_element_type=jnp.float32)
        h = jnp.maximum(h + hb_ref[i], 0.0)

    # fc2 + relu (padded width; pad lanes stay exactly zero).
    h = jnp.dot(h.astype(jnp.bfloat16), w2_ref[...],
                preferred_element_type=jnp.float32)
    h = jnp.maximum(h + b2_ref[...], 0.0)

    # fc3 (no activation) -> lane-dense (TB, 128) bf16 output slab.
    h = jnp.dot(h.astype(jnp.bfloat16), w3_ref[...],
                preferred_element_type=jnp.float32)
    out_ref[...] = (h + b3_ref[...]).astype(out_ref.dtype)


def breast_cancer_nn_forward(x, packed_params, *, num_grid_steps=1):
    """num_grid_steps=1 for v5e/v6e (single TC); use 2 on v7x (two TCs)."""
    (w1, b1, hw, hb, w2, b2, w3, b3) = packed_params
    batch = x.shape[0]

    # Equal batch tiles, each a multiple of 8 rows (f32 sublane).
    tb = _round_up(pl.cdiv(batch, num_grid_steps), 8)
    padded_batch = tb * num_grid_steps
    grid = (num_grid_steps,)

    # Pad features 30 -> 128 and batch -> padded_batch; keep x in f32 for fc1.
    x_p = jnp.zeros((padded_batch, F_PAD), jnp.float32)
    x_p = x_p.at[:batch, :N_FEATURES].set(x.astype(jnp.float32))

    const2 = lambda i: (0, 0)
    const3 = lambda i: (0, 0, 0)

    flops = 2 * padded_batch * (F_PAD * H1_PAD
                                + N_HIDDEN_LAYERS * H1_PAD * H1_PAD
                                + H1_PAD * H2_PAD + H2_PAD * OUT_PAD)
    param_bytes = sum(int(p.size) * p.dtype.itemsize for p in packed_params)
    bytes_accessed = (param_bytes + int(x_p.size) * 4
                      + padded_batch * OUT_PAD * 2)

    out = pl.pallas_call(
        mlp_kernel,
        out_shape=jax.ShapeDtypeStruct((padded_batch, OUT_PAD), jnp.bfloat16),
        grid=grid,
        in_specs=[
            pl.BlockSpec((tb, F_PAD), lambda i: (i, 0)),               # x tile
            pl.BlockSpec((F_PAD, H1_PAD), const2),                     # w1 (f32)
            pl.BlockSpec((1, H1_PAD), const2),                         # b1
            pl.BlockSpec((N_HIDDEN_LAYERS, H1_PAD, H1_PAD), const3),   # hidden Ws
            pl.BlockSpec((N_HIDDEN_LAYERS, 1, H1_PAD), const3),        # hidden bs
            pl.BlockSpec((H1_PAD, H2_PAD), const2),                    # w2
            pl.BlockSpec((1, H2_PAD), const2),                         # b2
            pl.BlockSpec((H2_PAD, OUT_PAD), const2),                   # w3
            pl.BlockSpec((1, OUT_PAD), const2),                        # b3
        ],
        out_specs=pl.BlockSpec((tb, OUT_PAD), lambda i: (i, 0)),
        compiler_params=pltpu.CompilerParams(
            dimension_semantics=("parallel",)),
        cost_estimate=pl.CostEstimate(flops=flops, transcendentals=0,
                                      bytes_accessed=bytes_accessed),
    )(x_p, w1, b1, hw, hb, w2, b2, w3, b3)

    # Slice away batch/logit padding (pad lanes are exactly zero); upcast.
    return out[:batch, :N_CLASSES].astype(jnp.float32)


def init_params(key):
    """Deterministic synthetic parameters at the PyTorch module's shapes."""
    ks = jax.random.split(key, 8)
    scale = 0.1
    w1 = scale * jax.random.normal(ks[0], (N_FEATURES, H1), jnp.float32)
    b1 = scale * jax.random.normal(ks[1], (H1,), jnp.float32)
    hw = scale * jax.random.normal(ks[2], (N_HIDDEN_LAYERS, H1, H1), jnp.float32)
    hb = scale * jax.random.normal(ks[3], (N_HIDDEN_LAYERS, H1), jnp.float32)
    w2 = scale * jax.random.normal(ks[4], (H1, H2), jnp.float32)
    b2 = scale * jax.random.normal(ks[5], (H2,), jnp.float32)
    w3 = scale * jax.random.normal(ks[6], (H2, N_CLASSES), jnp.float32)
    b3 = scale * jax.random.normal(ks[7], (N_CLASSES,), jnp.float32)
    return (w1, b1, hw, hb, w2, b2, w3, b3)


def pack_params(params):
    """Pad to hardware-friendly shapes.

    w1 stays f32 (matches f32 input for fc1); hidden/fc2/fc3 weights are bf16
    MXU operands; all biases are f32 rows (1, 128).  Padded rows/cols/lanes
    are zero, so the padded network is numerically identical on real lanes.
    """
    (w1, b1, hw, hb, w2, b2, w3, b3) = params
    w1_p = jnp.zeros((F_PAD, H1_PAD), jnp.float32).at[:N_FEATURES, :H1].set(w1)
    b1_p = jnp.zeros((1, H1_PAD), jnp.float32).at[0, :H1].set(b1)
    hw_p = jnp.zeros((N_HIDDEN_LAYERS, H1_PAD, H1_PAD), jnp.bfloat16)
    hw_p = hw_p.at[:, :H1, :H1].set(hw.astype(jnp.bfloat16))
    hb_p = jnp.zeros((N_HIDDEN_LAYERS, 1, H1_PAD), jnp.float32)
    hb_p = hb_p.at[:, 0, :H1].set(hb)
    w2_p = jnp.zeros((H1_PAD, H2_PAD), jnp.bfloat16).at[:H1, :H2].set(
        w2.astype(jnp.bfloat16))
    b2_p = jnp.zeros((1, H2_PAD), jnp.float32).at[0, :H2].set(b2)
    w3_p = jnp.zeros((H2_PAD, OUT_PAD), jnp.bfloat16).at[:H2, :N_CLASSES].set(
        w3.astype(jnp.bfloat16))
    b3_p = jnp.zeros((1, OUT_PAD), jnp.float32).at[0, :N_CLASSES].set(b3)
    return (w1_p, b1_p, hw_p, hb_p, w2_p, b2_p, w3_p, b3_p)


def reference_forward(x, params):
    """Pure-JAX f32 reference matching the PyTorch forward."""
    (w1, b1, hw, hb, w2, b2, w3, b3) = params
    h = jnp.maximum(x @ w1 + b1, 0.0)
    for i in range(N_HIDDEN_LAYERS):
        h = jnp.maximum(h @ hw[i] + hb[i], 0.0)
    h = jnp.maximum(h @ w2 + b2, 0.0)
    return h @ w3 + b3


if __name__ == "__main__":
    key = jax.random.PRNGKey(0)
    k_x, k_p = jax.random.split(key)

    batch = 8
    x = jax.random.normal(k_x, (batch, N_FEATURES), jnp.float32)
    params = init_params(k_p)
    packed = pack_params(params)

    out = breast_cancer_nn_forward(x, packed)  # num_grid_steps=2 on v7x
    out = jax.block_until_ready(out)

    ref = reference_forward(x, params)
    assert out.shape == (batch, N_CLASSES)
    # bf16 hidden-layer operands and bf16 output slab (f32 accumulation)
    # -> looser tolerance than a pure-f32 pipeline.
    tol = 2e-2 * (1.0 + float(jnp.max(jnp.abs(ref))))
    assert float(jnp.max(jnp.abs(out - ref))) < tol

    print("KERNEL_OK")
</pallas_src>

<mosaic_0001>
module attributes {stable_mosaic.version = 11 : i64} {
  func.func @mlp_kernel(%arg0: i32, %arg1: memref<8x128xf32, #tpu.memory_space<vmem>>, %arg2: memref<128x128xf32, #tpu.memory_space<vmem>>, %arg3: memref<1x128xf32, #tpu.memory_space<vmem>>, %arg4: memref<10x128x128xbf16, #tpu.memory_space<vmem>>, %arg5: memref<10x1x128xf32, #tpu.memory_space<vmem>>, %arg6: memref<128x128xbf16, #tpu.memory_space<vmem>>, %arg7: memref<1x128xf32, #tpu.memory_space<vmem>>, %arg8: memref<128x128xbf16, #tpu.memory_space<vmem>>, %arg9: memref<1x128xf32, #tpu.memory_space<vmem>>, %arg10: memref<8x128xbf16, #tpu.memory_space<vmem>>) attributes {dimension_semantics = [#tpu.dimension_semantics<parallel>], iteration_bounds = array<i64: 1>, scalar_prefetch = 0 : i64, scratch_operands = 0 : i64, tpu.core_type = #tpu.core_type<tc>, window_params = [{transform_indices = @transform_0, window_bounds = array<i64: 8, 128>}, {pipeline_mode = #tpu.pipeline_mode<synchronous>, transform_indices = @transform_1, window_bounds = array<i64: 128, 128>}, {pipeline_mode = #tpu.pipeline_mode<synchronous>, transform_indices = @transform_2, window_bounds = array<i64: 1, 128>}, {pipeline_mode = #tpu.pipeline_mode<synchronous>, transform_indices = @transform_3, window_bounds = array<i64: 10, 128, 128>}, {pipeline_mode = #tpu.pipeline_mode<synchronous>, transform_indices = @transform_4, window_bounds = array<i64: 10, 1, 128>}, {pipeline_mode = #tpu.pipeline_mode<synchronous>, transform_indices = @transform_5, window_bounds = array<i64: 128, 128>}, {pipeline_mode = #tpu.pipeline_mode<synchronous>, transform_indices = @transform_6, window_bounds = array<i64: 1, 128>}, {pipeline_mode = #tpu.pipeline_mode<synchronous>, transform_indices = @transform_7, window_bounds = array<i64: 128, 128>}, {pipeline_mode = #tpu.pipeline_mode<synchronous>, transform_indices = @transform_8, window_bounds = array<i64: 1, 128>}, {transform_indices = @transform_9, window_bounds = array<i64: 8, 128>}]} {
    %c0 = arith.constant 0 : index
    %c0_0 = arith.constant 0 : index
    %0 = vector.load %arg1[%c0, %c0_0] : memref<8x128xf32, #tpu.memory_space<vmem>>, vector<8x128xf32>
    %c0_1 = arith.constant 0 : index
    %c0_2 = arith.constant 0 : index
    %1 = vector.load %arg2[%c0_1, %c0_2] : memref<128x128xf32, #tpu.memory_space<vmem>>, vector<128x128xf32>
    %cst = arith.constant dense<0.000000e+00> : vector<8x128xf32>
    %2 = tpu.matmul %0, %1, %cst {dimension_numbers = #tpu.dot_dimension_numbers<[1], [0], [0], [1], [0, 0, 1, 1], [], []>} : vector<8x128xf32>, vector<128x128xf32>, vector<8x128xf32> -> vector<8x128xf32>
    %c0_3 = arith.constant 0 : index
    %c0_4 = arith.constant 0 : index
    %3 = vector.load %arg3[%c0_3, %c0_4] : memref<1x128xf32, #tpu.memory_space<vmem>>, vector<1x128xf32>
    %4 = vector.broadcast %3 : vector<1x128xf32> to vector<8x128xf32>
    %5 = arith.addf %2, %4 : vector<8x128xf32>
    %cst_5 = arith.constant 0.000000e+00 : f32
    %6 = vector.broadcast %cst_5 : f32 to vector<8x128xf32>
    %7 = arith.maximumf %5, %6 : vector<8x128xf32>
    %8 = arith.truncf %7 : vector<8x128xf32> to vector<8x128xbf16>
    %c0_6 = arith.constant 0 : index
    %c0_7 = arith.constant 0 : index
    %c0_8 = arith.constant 0 : index
    %9 = vector.load %arg4[%c0_6, %c0_7, %c0_8] : memref<10x128x128xbf16, #tpu.memory_space<vmem>>, vector<1x128x128xbf16>
    %10 = vector.shape_cast %9 : vector<1x128x128xbf16> to vector<128x128xbf16>
    %cst_9 = arith.constant dense<0.000000e+00> : vector<8x128xf32>
    %11 = tpu.matmul %8, %10, %cst_9 {dimension_numbers = #tpu.dot_dimension_numbers<[1], [0], [0], [1], [0, 0, 1, 1], [], []>} : vector<8x128xbf16>, vector<128x128xbf16>, vector<8x128xf32> -> vector<8x128xf32>
    %c0_10 = arith.constant 0 : index
    %c0_11 = arith.constant 0 : index
    %c0_12 = arith.constant 0 : index
    %12 = vector.load %arg5[%c0_10, %c0_11, %c0_12] : memref<10x1x128xf32, #tpu.memory_space<vmem>>, vector<1x1x128xf32>
    %13 = vector.shape_cast %12 : vector<1x1x128xf32> to vector<1x128xf32>
    %14 = vector.broadcast %13 : vector<1x128xf32> to vector<8x128xf32>
    %15 = arith.addf %11, %14 : vector<8x128xf32>
    %cst_13 = arith.constant 0.000000e+00 : f32
    %16 = vector.broadcast %cst_13 : f32 to vector<8x128xf32>
    %17 = arith.maximumf %15, %16 : vector<8x128xf32>
    %18 = arith.truncf %17 : vector<8x128xf32> to vector<8x128xbf16>
    %c1 = arith.constant 1 : index
    %c0_14 = arith.constant 0 : index
    %c0_15 = arith.constant 0 : index
    %19 = vector.load %arg4[%c1, %c0_14, %c0_15] : memref<10x128x128xbf16, #tpu.memory_space<vmem>>, vector<1x128x128xbf16>
    %20 = vector.shape_cast %19 : vector<1x128x128xbf16> to vector<128x128xbf16>
    %cst_16 = arith.constant dense<0.000000e+00> : vector<8x128xf32>
    %21 = tpu.matmul %18, %20, %cst_16 {dimension_numbers = #tpu.dot_dimension_numbers<[1], [0], [0], [1], [0, 0, 1, 1], [], []>} : vector<8x128xbf16>, vector<128x128xbf16>, vector<8x128xf32> -> vector<8x128xf32>
    %c1_17 = arith.constant 1 : index
    %c0_18 = arith.constant 0 : index
    %c0_19 = arith.constant 0 : index
    %22 = vector.load %arg5[%c1_17, %c0_18, %c0_19] : memref<10x1x128xf32, #tpu.memory_space<vmem>>, vector<1x1x128xf32>
    %23 = vector.shape_cast %22 : vector<1x1x128xf32> to vector<1x128xf32>
    %24 = vector.broadcast %23 : vector<1x128xf32> to vector<8x128xf32>
    %25 = arith.addf %21, %24 : vector<8x128xf32>
    %cst_20 = arith.constant 0.000000e+00 : f32
    %26 = vector.broadcast %cst_20 : f32 to vector<8x128xf32>
    %27 = arith.maximumf %25, %26 : vector<8x128xf32>
    %28 = arith.truncf %27 : vector<8x128xf32> to vector<8x128xbf16>
    %c2 = arith.constant 2 : index
    %c0_21 = arith.constant 0 : index
    %c0_22 = arith.constant 0 : index
    %29 = vector.load %arg4[%c2, %c0_21, %c0_22] : memref<10x128x128xbf16, #tpu.memory_space<vmem>>, vector<1x128x128xbf16>
    %30 = vector.shape_cast %29 : vector<1x128x128xbf16> to vector<128x128xbf16>
    %cst_23 = arith.constant dense<0.000000e+00> : vector<8x128xf32>
    %31 = tpu.matmul %28, %30, %cst_23 {dimension_numbers = #tpu.dot_dimension_numbers<[1], [0], [0], [1], [0, 0, 1, 1], [], []>} : vector<8x128xbf16>, vector<128x128xbf16>, vector<8x128xf32> -> vector<8x128xf32>
    %c2_24 = arith.constant 2 : index
    %c0_25 = arith.constant 0 : index
    %c0_26 = arith.constant 0 : index
    %32 = vector.load %arg5[%c2_24, %c0_25, %c0_26] : memref<10x1x128xf32, #tpu.memory_space<vmem>>, vector<1x1x128xf32>
    %33 = vector.shape_cast %32 : vector<1x1x128xf32> to vector<1x128xf32>
    %34 = vector.broadcast %33 : vector<1x128xf32> to vector<8x128xf32>
    %35 = arith.addf %31, %34 : vector<8x128xf32>
    %cst_27 = arith.constant 0.000000e+00 : f32
    %36 = vector.broadcast %cst_27 : f32 to vector<8x128xf32>
    %37 = arith.maximumf %35, %36 : vector<8x128xf32>
    %38 = arith.truncf %37 : vector<8x128xf32> to vector<8x128xbf16>
    %c3 = arith.constant 3 : index
    %c0_28 = arith.constant 0 : index
    %c0_29 = arith.constant 0 : index
    %39 = vector.load %arg4[%c3, %c0_28, %c0_29] : memref<10x128x128xbf16, #tpu.memory_space<vmem>>, vector<1x128x128xbf16>
    %40 = vector.shape_cast %39 : vector<1x128x128xbf16> to vector<128x128xbf16>
    %cst_30 = arith.constant dense<0.000000e+00> : vector<8x128xf32>
    %41 = tpu.matmul %38, %40, %cst_30 {dimension_numbers = #tpu.dot_dimension_numbers<[1], [0], [0], [1], [0, 0, 1, 1], [], []>} : vector<8x128xbf16>, vector<128x128xbf16>, vector<8x128xf32> -> vector<8x128xf32>
    %c3_31 = arith.constant 3 : index
    %c0_32 = arith.constant 0 : index
    %c0_33 = arith.constant 0 : index
    %42 = vector.load %arg5[%c3_31, %c0_32, %c0_33] : memref<10x1x128xf32, #tpu.memory_space<vmem>>, vector<1x1x128xf32>
    %43 = vector.shape_cast %42 : vector<1x1x128xf32> to vector<1x128xf32>
    %44 = vector.broadcast %43 : vector<1x128xf32> to vector<8x128xf32>
    %45 = arith.addf %41, %44 : vector<8x128xf32>
    %cst_34 = arith.constant 0.000000e+00 : f32
    %46 = vector.broadcast %cst_34 : f32 to vector<8x128xf32>
    %47 = arith.maximumf %45, %46 : vector<8x128xf32>
    %48 = arith.truncf %47 : vector<8x128xf32> to vector<8x128xbf16>
    %c4 = arith.constant 4 : index
    %c0_35 = arith.constant 0 : index
    %c0_36 = arith.constant 0 : index
    %49 = vector.load %arg4[%c4, %c0_35, %c0_36] : memref<10x128x128xbf16, #tpu.memory_space<vmem>>, vector<1x128x128xbf16>
    %50 = vector.shape_cast %49 : vector<1x128x128xbf16> to vector<128x128xbf16>
    %cst_37 = arith.constant dense<0.000000e+00> : vector<8x128xf32>
    %51 = tpu.matmul %48, %50, %cst_37 {dimension_numbers = #tpu.dot_dimension_numbers<[1], [0], [0], [1], [0, 0, 1, 1], [], []>} : vector<8x128xbf16>, vector<128x128xbf16>, vector<8x128xf32> -> vector<8x128xf32>
    %c4_38 = arith.constant 4 : index
    %c0_39 = arith.constant 0 : index
    %c0_40 = arith.constant 0 : index
    %52 = vector.load %arg5[%c4_38, %c0_39, %c0_40] : memref<10x1x128xf32, #tpu.memory_space<vmem>>, vector<1x1x128xf32>
    %53 = vector.shape_cast %52 : vector<1x1x128xf32> to vector<1x128xf32>
    %54 = vector.broadcast %53 : vector<1x128xf32> to vector<8x128xf32>
    %55 = arith.addf %51, %54 : vector<8x128xf32>
    %cst_41 = arith.constant 0.000000e+00 : f32
    %56 = vector.broadcast %cst_41 : f32 to vector<8x128xf32>
    %57 = arith.maximumf %55, %56 : vector<8x128xf32>
    %58 = arith.truncf %57 : vector<8x128xf32> to vector<8x128xbf16>
    %c5 = arith.constant 5 : index
    %c0_42 = arith.constant 0 : index
    %c0_43 = arith.constant 0 : index
    %59 = vector.load %arg4[%c5, %c0_42, %c0_43] : memref<10x128x128xbf16, #tpu.memory_space<vmem>>, vector<1x128x128xbf16>
    %60 = vector.shape_cast %59 : vector<1x128x128xbf16> to vector<128x128xbf16>
    %cst_44 = arith.constant dense<0.000000e+00> : vector<8x128xf32>
    %61 = tpu.matmul %58, %60, %cst_44 {dimension_numbers = #tpu.dot_dimension_numbers<[1], [0], [0], [1], [0, 0, 1, 1], [], []>} : vector<8x128xbf16>, vector<128x128xbf16>, vector<8x128xf32> -> vector<8x128xf32>
    %c5_45 = arith.constant 5 : index
    %c0_46 = arith.constant 0 : index
    %c0_47 = arith.constant 0 : index
    %62 = vector.load %arg5[%c5_45, %c0_46, %c0_47] : memref<10x1x128xf32, #tpu.memory_space<vmem>>, vector<1x1x128xf32>
    %63 = vector.shape_cast %62 : vector<1x1x128xf32> to vector<1x128xf32>
    %64 = vector.broadcast %63 : vector<1x128xf32> to vector<8x128xf32>
    %65 = arith.addf %61, %64 : vector<8x128xf32>
    %cst_48 = arith.constant 0.000000e+00 : f32
    %66 = vector.broadcast %cst_48 : f32 to vector<8x128xf32>
    %67 = arith.maximumf %65, %66 : vector<8x128xf32>
    %68 = arith.truncf %67 : vector<8x128xf32> to vector<8x128xbf16>
    %c6 = arith.constant 6 : index
    %c0_49 = arith.constant 0 : index
    %c0_50 = arith.constant 0 : index
    %69 = vector.load %arg4[%c6, %c0_49, %c0_50] : memref<10x128x128xbf16, #tpu.memory_space<vmem>>, vector<1x128x128xbf16>
    %70 = vector.shape_cast %69 : vector<1x128x128xbf16> to vector<128x128xbf16>
    %cst_51 = arith.constant dense<0.000000e+00> : vector<8x128xf32>
    %71 = tpu.matmul %68, %70, %cst_51 {dimension_numbers = #tpu.dot_dimension_numbers<[1], [0], [0], [1], [0, 0, 1, 1], [], []>} : vector<8x128xbf16>, vector<128x128xbf16>, vector<8x128xf32> -> vector<8x128xf32>
    %c6_52 = arith.constant 6 : index
    %c0_53 = arith.constant 0 : index
    %c0_54 = arith.constant 0 : index
    %72 = vector.load %arg5[%c6_52, %c0_53, %c0_54] : memref<10x1x128xf32, #tpu.memory_space<vmem>>, vector<1x1x128xf32>
    %73 = vector.shape_cast %72 : vector<1x1x128xf32> to vector<1x128xf32>
    %74 = vector.broadcast %73 : vector<1x128xf32> to vector<8x128xf32>
    %75 = arith.addf %71, %74 : vector<8x128xf32>
    %cst_55 = arith.constant 0.000000e+00 : f32
    %76 = vector.broadcast %cst_55 : f32 to vector<8x128xf32>
    %77 = arith.maximumf %75, %76 : vector<8x128xf32>
    %78 = arith.truncf %77 : vector<8x128xf32> to vector<8x128xbf16>
    %c7 = arith.constant 7 : index
    %c0_56 = arith.constant 0 : index
    %c0_57 = arith.constant 0 : index
    %79 = vector.load %arg4[%c7, %c0_56, %c0_57] : memref<10x128x128xbf16, #tpu.memory_space<vmem>>, vector<1x128x128xbf16>
    %80 = vector.shape_cast %79 : vector<1x128x128xbf16> to vector<128x128xbf16>
    %cst_58 = arith.constant dense<0.000000e+00> : vector<8x128xf32>
    %81 = tpu.matmul %78, %80, %cst_58 {dimension_numbers = #tpu.dot_dimension_numbers<[1], [0], [0], [1], [0, 0, 1, 1], [], []>} : vector<8x128xbf16>, vector<128x128xbf16>, vector<8x128xf32> -> vector<8x128xf32>
    %c7_59 = arith.constant 7 : index
    %c0_60 = arith.constant 0 : index
    %c0_61 = arith.constant 0 : index
    %82 = vector.load %arg5[%c7_59, %c0_60, %c0_61] : memref<10x1x128xf32, #tpu.memory_space<vmem>>, vector<1x1x128xf32>
    %83 = vector.shape_cast %82 : vector<1x1x128xf32> to vector<1x128xf32>
    %84 = vector.broadcast %83 : vector<1x128xf32> to vector<8x128xf32>
    %85 = arith.addf %81, %84 : vector<8x128xf32>
    %cst_62 = arith.constant 0.000000e+00 : f32
    %86 = vector.broadcast %cst_62 : f32 to vector<8x128xf32>
    %87 = arith.maximumf %85, %86 : vector<8x128xf32>
    %88 = arith.truncf %87 : vector<8x128xf32> to vector<8x128xbf16>
    %c8 = arith.constant 8 : index
    %c0_63 = arith.constant 0 : index
    %c0_64 = arith.constant 0 : index
    %89 = vector.load %arg4[%c8, %c0_63, %c0_64] : memref<10x128x128xbf16, #tpu.memory_space<vmem>>, vector<1x128x128xbf16>
    %90 = vector.shape_cast %89 : vector<1x128x128xbf16> to vector<128x128xbf16>
    %cst_65 = arith.constant dense<0.000000e+00> : vector<8x128xf32>
    %91 = tpu.matmul %88, %90, %cst_65 {dimension_numbers = #tpu.dot_dimension_numbers<[1], [0], [0], [1], [0, 0, 1, 1], [], []>} : vector<8x128xbf16>, vector<128x128xbf16>, vector<8x128xf32> -> vector<8x128xf32>
    %c8_66 = arith.constant 8 : index
    %c0_67 = arith.constant 0 : index
    %c0_68 = arith.constant 0 : index
    %92 = vector.load %arg5[%c8_66, %c0_67, %c0_68] : memref<10x1x128xf32, #tpu.memory_space<vmem>>, vector<1x1x128xf32>
    %93 = vector.shape_cast %92 : vector<1x1x128xf32> to vector<1x128xf32>
    %94 = vector.broadcast %93 : vector<1x128xf32> to vector<8x128xf32>
    %95 = arith.addf %91, %94 : vector<8x128xf32>
    %cst_69 = arith.constant 0.000000e+00 : f32
    %96 = vector.broadcast %cst_69 : f32 to vector<8x128xf32>
    %97 = arith.maximumf %95, %96 : vector<8x128xf32>
    %98 = arith.truncf %97 : vector<8x128xf32> to vector<8x128xbf16>
    %c9 = arith.constant 9 : index
    %c0_70 = arith.constant 0 : index
    %c0_71 = arith.constant 0 : index
    %99 = vector.load %arg4[%c9, %c0_70, %c0_71] : memref<10x128x128xbf16, #tpu.memory_space<vmem>>, vector<1x128x128xbf16>
    %100 = vector.shape_cast %99 : vector<1x128x128xbf16> to vector<128x128xbf16>
    %cst_72 = arith.constant dense<0.000000e+00> : vector<8x128xf32>
    %101 = tpu.matmul %98, %100, %cst_72 {dimension_numbers = #tpu.dot_dimension_numbers<[1], [0], [0], [1], [0, 0, 1, 1], [], []>} : vector<8x128xbf16>, vector<128x128xbf16>, vector<8x128xf32> -> vector<8x128xf32>
    %c9_73 = arith.constant 9 : index
    %c0_74 = arith.constant 0 : index
    %c0_75 = arith.constant 0 : index
    %102 = vector.load %arg5[%c9_73, %c0_74, %c0_75] : memref<10x1x128xf32, #tpu.memory_space<vmem>>, vector<1x1x128xf32>
    %103 = vector.shape_cast %102 : vector<1x1x128xf32> to vector<1x128xf32>
    %104 = vector.broadcast %103 : vector<1x128xf32> to vector<8x128xf32>
    %105 = arith.addf %101, %104 : vector<8x128xf32>
    %cst_76 = arith.constant 0.000000e+00 : f32
    %106 = vector.broadcast %cst_76 : f32 to vector<8x128xf32>
    %107 = arith.maximumf %105, %106 : vector<8x128xf32>
    %108 = arith.truncf %107 : vector<8x128xf32> to vector<8x128xbf16>
    %c0_77 = arith.constant 0 : index
    %c0_78 = arith.constant 0 : index
    %109 = vector.load %arg6[%c0_77, %c0_78] : memref<128x128xbf16, #tpu.memory_space<vmem>>, vector<128x128xbf16>
    %cst_79 = arith.constant dense<0.000000e+00> : vector<8x128xf32>
    %110 = tpu.matmul %108, %109, %cst_79 {dimension_numbers = #tpu.dot_dimension_numbers<[1], [0], [0], [1], [0, 0, 1, 1], [], []>} : vector<8x128xbf16>, vector<128x128xbf16>, vector<8x128xf32> -> vector<8x128xf32>
    %c0_80 = arith.constant 0 : index
    %c0_81 = arith.constant 0 : index
    %111 = vector.load %arg7[%c0_80, %c0_81] : memref<1x128xf32, #tpu.memory_space<vmem>>, vector<1x128xf32>
    %112 = vector.broadcast %111 : vector<1x128xf32> to vector<8x128xf32>
    %113 = arith.addf %110, %112 : vector<8x128xf32>
    %cst_82 = arith.constant 0.000000e+00 : f32
    %114 = vector.broadcast %cst_82 : f32 to vector<8x128xf32>
    %115 = arith.maximumf %113, %114 : vector<8x128xf32>
    %116 = arith.truncf %115 : vector<8x128xf32> to vector<8x128xbf16>
    %c0_83 = arith.constant 0 : index
    %c0_84 = arith.constant 0 : index
    %117 = vector.load %arg8[%c0_83, %c0_84] : memref<128x128xbf16, #tpu.memory_space<vmem>>, vector<128x128xbf16>
    %cst_85 = arith.constant dense<0.000000e+00> : vector<8x128xf32>
    %118 = tpu.matmul %116, %117, %cst_85 {dimension_numbers = #tpu.dot_dimension_numbers<[1], [0], [0], [1], [0, 0, 1, 1], [], []>} : vector<8x128xbf16>, vector<128x128xbf16>, vector<8x128xf32> -> vector<8x128xf32>
    %c0_86 = arith.constant 0 : index
    %c0_87 = arith.constant 0 : index
    %119 = vector.load %arg9[%c0_86, %c0_87] : memref<1x128xf32, #tpu.memory_space<vmem>>, vector<1x128xf32>
    %120 = vector.broadcast %119 : vector<1x128xf32> to vector<8x128xf32>
    %121 = arith.addf %118, %120 : vector<8x128xf32>
    %122 = arith.truncf %121 : vector<8x128xf32> to vector<8x128xbf16>
    %c0_88 = arith.constant 0 : index
    %c0_89 = arith.constant 0 : index
    %123 = vector.load %arg10[%c0_88, %c0_89] : memref<8x128xbf16, #tpu.memory_space<vmem>>, vector<8x128xbf16>
    tpu.vector_store %arg10[%c0_88, %c0_89], %122 {strides = array<i32>} : memref<8x128xbf16, #tpu.memory_space<vmem>>, vector<8x128xbf16>,
    return
  }
  func.func @transform_0(%arg0: i32) -> (i32, i32) {
    %c0_i32 = arith.constant 0 : i32
    %c0_i32_0 = arith.constant 0 : i32
    return %arg0, %c0_i32 : i32, i32
  }
  func.func @transform_1(%arg0: i32) -> (i32, i32) {
    %c0_i32 = arith.constant 0 : i32
    %c0_i32_0 = arith.constant 0 : i32
    %c0_i32_1 = arith.constant 0 : i32
    return %c0_i32, %c0_i32_0 : i32, i32
  }
  func.func @transform_2(%arg0: i32) -> (i32, i32) {
    %c0_i32 = arith.constant 0 : i32
    %c0_i32_0 = arith.constant 0 : i32
    %c0_i32_1 = arith.constant 0 : i32
    return %c0_i32, %c0_i32_0 : i32, i32
  }
  func.func @transform_3(%arg0: i32) -> (i32, i32, i32) {
    %c0_i32 = arith.constant 0 : i32
    %c0_i32_0 = arith.constant 0 : i32
    %c0_i32_1 = arith.constant 0 : i32
    %c0_i32_2 = arith.constant 0 : i32
    return %c0_i32, %c0_i32_0, %c0_i32_1 : i32, i32, i32
  }
  func.func @transform_4(%arg0: i32) -> (i32, i32, i32) {
    %c0_i32 = arith.constant 0 : i32
    %c0_i32_0 = arith.constant 0 : i32
    %c0_i32_1 = arith.constant 0 : i32
    %c0_i32_2 = arith.constant 0 : i32
    return %c0_i32, %c0_i32_0, %c0_i32_1 : i32, i32, i32
  }
  func.func @transform_5(%arg0: i32) -> (i32, i32) {
    %c0_i32 = arith.constant 0 : i32
    %c0_i32_0 = arith.constant 0 : i32
    %c0_i32_1 = arith.constant 0 : i32
    return %c0_i32, %c0_i32_0 : i32, i32
  }
  func.func @transform_6(%arg0: i32) -> (i32, i32) {
    %c0_i32 = arith.constant 0 : i32
    %c0_i32_0 = arith.constant 0 : i32
    %c0_i32_1 = arith.constant 0 : i32
    return %c0_i32, %c0_i32_0 : i32, i32
  }
  func.func @transform_7(%arg0: i32) -> (i32, i32) {
    %c0_i32 = arith.constant 0 : i32
    %c0_i32_0 = arith.constant 0 : i32
    %c0_i32_1 = arith.constant 0 : i32
    return %c0_i32, %c0_i32_0 : i32, i32
  }
  func.func @transform_8(%arg0: i32) -> (i32, i32) {
    %c0_i32 = arith.constant 0 : i32
    %c0_i32_0 = arith.constant 0 : i32
    %c0_i32_1 = arith.constant 0 : i32
    return %c0_i32, %c0_i32_0 : i32, i32
  }
  func.func @transform_9(%arg0: i32) -> (i32, i32) {
    %c0_i32 = arith.constant 0 : i32
    %c0_i32_0 = arith.constant 0 : i32
    return %arg0, %c0_i32 : i32, i32
  }
}

</mosaic_0001>

<bundles_post_ra>
// kernel: tpu_custom_call.1
= control target key start
LH: loop header
LB: loop body
LE: loop exit
PB: predicated region body
PF: predicated region fallthrough
CT: control target
= control target key end

     0   :  { %14 = vsyncpa [#allocation3], 0  ;;  %s1979_s0 = inlined_call_operand.hbm [shape: f32[8,128], index: 0, kind: input, shape index: {}]   ;;  %s1980_s1 = inlined_call_operand.hbm [shape: f32[128,128], index: 1, kind: input, shape index: {}]   ;;  %s1981_s2 = inlined_call_operand.vmem [shape: f32[1,128], index: 2, kind: input, shape index: {}]   ;;  %s1982_s3 = inlined_call_operand.hbm [shape: bf16[10,128,128], index: 3, kind: input, shape index: {}]   ;;  %s1983_s4 = inlined_call_operand.hbm [shape: f32[10,1,128], index: 4, kind: input, shape index: {}]   ;;  %s1984_s5 = inlined_call_operand.hbm [shape: bf16[128,128], index: 5, kind: input, shape index: {}]   ;;  %s1985_s6 = inlined_call_operand.vmem [shape: f32[1,128], index: 6, kind: input, shape index: {}]   ;;  %s1986_s7 = inlined_call_operand.hbm [shape: bf16[128,128], index: 7, kind: input, shape index: {}]   ;;  %s1987_s8 = inlined_call_operand.vmem [shape: f32[1,128], index: 8, kind: input, shape index: {}]   ;;  %s1988_s9 = inlined_call_operand.hbm [shape: bf16[8,128], index: 9, kind: output, shape index: {}]  }
   0x1   :  { %15 = vsyncpa [#allocation6], 0 }
   0x2   :  { %16 = vsyncpa [#allocation9], 0 }
   0x3   :  { %17 = vsyncpa [#allocation12], 0  ;;  %s34_s11 = sshll.u32 %s1980_s1, 4  ;;  %s35_s11 = int_to_ptr.hbm [resolvable:$true] %s34_s11 }
   0x4   :  { %18 = vsyncpa [#allocation4], 0  ;;  %s1886_s12 = smov [#allocation5]   ;;  %s62_s16 = sshll.u32 %s1983_s4, 4  ;;  %s63_s16 = int_to_ptr.hbm [resolvable:$true] %s62_s16 }
   0x5   :  { %s36_s13 = sshll.u32 %s1886_s12, 4  ;;  %s1887_s17 = smov 128   ;;  %s37_s13 = int_to_ptr.vmem [resolvable:$true] %s36_s13 }
   0x6   :  { %s1888_s18 = smov 8   ;;  %s1889_s19 = smov [#allocation8]  }
   0x7   :  { %42 = dma.hbm_to_vmem [thread:$0]  %s35_s11, 2048, %s37_s13, [#allocation6], %s1887_s17, %s1887_s17, %s1888_s18  }
   0x8   :  { %s64_s20 = sshll.u32 %s1889_s19, 4  ;;  %s1890_s21 = smov 16   ;;  %s65_s20 = int_to_ptr.vmem [resolvable:$true] %s64_s20 }
   0x9   :  { %s1891_s22 = smov 1   ;;  %s24_s24 = sshll.u32 %s1979_s0, 4  ;;  %s25_s24 = int_to_ptr.hbm [resolvable:$true] %s24_s24 }
   0xa   :  { %70 = dma.hbm_to_vmem [thread:$0]  %s63_s16, 160, %s65_s20, [#allocation9], %s1890_s21, %s1890_s21, %s1891_s22  }
   0xb   :  { %s1892_s25 = smov [#allocation2]   ;;  %s49_s28 = sshll.u32 %s1982_s3, 4  ;;  %s50_s28 = int_to_ptr.hbm [resolvable:$true] %s49_s28 }
   0xc   :  { %s26_s26 = sshll.u32 %s1892_s25, 4  ;;  %s1893_s29 = smov [#allocation7]   ;;  %s27_s26 = int_to_ptr.vmem [resolvable:$true] %s26_s26 }
   0xd   :  { %29 = dma.hbm_to_vmem [thread:$0]  %s25_s24, 128, %s27_s26, [#allocation3]  }
   0xe   :  { %s51_s30 = sshll.u32 %s1893_s29, 4  ;;  %s1894_s10 = smov 64   ;;  %s52_s30 = int_to_ptr.vmem [resolvable:$true] %s51_s30 }
   0xf   :  { %s1895_s11 = smov 4   ;;  %s75_s0 = sshll.u32 %s1984_s5, 4  ;;  %s76_s0 = int_to_ptr.hbm [resolvable:$true] %s75_s0 }
  0x10   :  { %57 = dma.hbm_to_vmem [thread:$0]  %s50_s28, 10240, %s52_s30, [#allocation6], %s1894_s10, %s1894_s10, %s1895_s11  }
  0x11   :  { %s1896_s14 = smov [#allocation10]   ;;  %s90_s3 = sshll.u32 %s1986_s7, 4  ;;  %s91_s3 = int_to_ptr.hbm [resolvable:$true] %s90_s3 }
  0x12   :  { %s77_s15 = sshll.u32 %s1896_s14, 4  ;;  %s1897_s18 = smov [#allocation11]   ;;  %s78_s15 = int_to_ptr.vmem [resolvable:$true] %s77_s15 }
  0x13   :  { %83 = dma.hbm_to_vmem [thread:$0]  %s76_s0, 1024, %s78_s15, [#allocation9], %s1894_s10, %s1894_s10, %s1895_s11  }
  0x14   :  { %s92_s19 = sshll.u32 %s1897_s18, 4  ;;  %s93_s19 = int_to_ptr.vmem [resolvable:$true] %s92_s19 }
  0x15   :  { %98 = dma.hbm_to_vmem [thread:$0]  %s91_s3, 1024, %s93_s19, [#allocation12], %s1894_s10, %s1894_s10, %s1895_s11  }
  0x16   :  { %1876 = dma.done.wait [#allocation3], 128  }
  0x17   :  { %1877 = vsyncadd [#allocation3], 4294967168 }
  0x18   :  { %1878 = dma.done.wait [#allocation6], 12288  }
  0x19   :  { %1879 = vsyncadd [#allocation6], 4294955008 }
  0x1a   :  { %1880 = dma.done.wait [#allocation9], 1184  }
  0x1b   :  { %1881 = vsyncadd [#allocation9], 4294966112 }
  0x1c   :  { %1882 = dma.done.wait [#allocation12], 1024  }
  0x1d   :  { %1883 = vsyncadd [#allocation12], 4294966272  ;;  %v141_v0 = vld [vmem:[#allocation5 + $0x78] sm:$0xff]  ;;  %v140_v1 = vld [vmem:[#allocation5 + $0x70] sm:$0xff]  ;;  %s1898_s1 = smov [#allocation13]   ;;  %s1189_s26 = sshll.u32 %s1988_s9, 4  ;;  %s1190_s26 = int_to_ptr.hbm [resolvable:$true] %s1189_s26 }
  0x1e   :  { %146 = vmatpush.msra.mxu0 %v141_v0  ;;  %v139_v2 = vld [vmem:[#allocation5 + $0x68] sm:$0xff]  ;;  %v138_v3 = vld [vmem:[#allocation5 + $0x60] sm:$0xff]  ;;  %v1593_v4 = vld [vmem:[#allocation7 + $0x38] sm:$0xff]  ;;  %s1187_s23 = sshll.u32 %s1898_s1, 4  ;;  %s1188_s23 = int_to_ptr.vmem [resolvable:$true] %s1187_s23 }
  0x1f   :  { %v137_v5 = vld [vmem:[#allocation5 + $0x58] sm:$0xff]  ;;  %v136_v6 = vld [vmem:[#allocation5 + $0x50] sm:$0xff]  ;;  %236 = vmatpush.bf16.msra.mxu1 %v1593_v4  ;;  %v135_v8 = vld [vmem:[#allocation5 + $0x48] sm:$0xff] }
  0x20   :  { %147 = vmatpush.msra.mxu0 %v140_v1  ;;  %v1592_v7 = vld [vmem:[#allocation7 + $0x30] sm:$0xff]  ;;  %v1591_v9 = vld [vmem:[#allocation7 + $0x28] sm:$0xff]  ;;  %v134_v10 = vld [vmem:[#allocation5 + $0x40] sm:$0xff] }
  0x21   :  { %v133_v11 = vld [vmem:[#allocation5 + $0x38] sm:$0xff]  ;;  %v1590_v12 = vld [vmem:[#allocation7 + $0x20] sm:$0xff]  ;;  %v132_v13 = vld [vmem:[#allocation5 + $0x30] sm:$0xff] }
  0x22   :  { %148 = vmatpush.msra.mxu0 %v139_v2  ;;  %v131_v14 = vld [vmem:[#allocation5 + $0x28] sm:$0xff]  ;;  %v1589_v15 = vld [vmem:[#allocation7 + $0x18] sm:$0xff]  ;;  %v130_v16 = vld [vmem:[#allocation5 + $0x20] sm:$0xff] }
  0x23   :  { %237 = vmatpush.bf16.msra.mxu1 %v1592_v7  ;;  %v129_v17 = vld [vmem:[#allocation5 + $0x18] sm:$0xff]  ;;  %v1588_v18 = vld [vmem:[#allocation7 + $0x10] sm:$0xff]  ;;  %v127_v20 = vld [vmem:[#allocation5 + $0x8] sm:$0xff] }
  0x24   :  { %149 = vmatpush.msra.mxu0 %v138_v3  ;;  %v128_v19 = vld [vmem:[#allocation5 + $0x10] sm:$0xff]  ;;  %v126_v21 = vld [vmem:[#allocation5] sm:$0xff]  ;;  %v125_v22 = vld [vmem:[#allocation2] sm:$0xff] }
  0x25   :  { %v1587_v23 = vld [vmem:[#allocation7 + $0x8] sm:$0xff]  ;;  %v1586_v24 = vld [vmem:[#allocation7] sm:$0xff]  ;;  %v1601_v25 = vld [vmem:[#allocation7 + $0x78] sm:$0xff] }
  0x26   :  { %150 = vmatpush.msra.mxu0 %v137_v5  ;;  %321 = vmatpush.bf16.msra.mxu2 %v1601_v25  ;;  %v1600_v26 = vld [vmem:[#allocation7 + $0x70] sm:$0xff]  ;;  %v1599_v27 = vld [vmem:[#allocation7 + $0x68] sm:$0xff]  ;;  %v1598_v28 = vld [vmem:[#allocation7 + $0x60] sm:$0xff] }
  0x27   :  { %238 = vmatpush.bf16.msra.mxu1 %v1591_v9  ;;  %v1597_v29 = vld [vmem:[#allocation7 + $0x58] sm:$0xff]  ;;  %v1596_v30 = vld [vmem:[#allocation7 + $0x50] sm:$0xff]  ;;  %v1595_v36 = vld [vmem:[#allocation7 + $0x48] sm:$0xff] }
  0x28   :  { %151 = vmatpush.msra.mxu0 %v136_v6  ;;  %v1695_v31 = vld [vmem:[%s1981_s2] ss:$0 sm:$0xff]  ;;  %v1594_v37 = vld [vmem:[#allocation7 + $0x40] sm:$0xff]  ;;  %v1608_v39 = vld [vmem:[#allocation7 + $0xb0] sm:$0xff] }
  0x29   :  { %v1609_v38 = vld [vmem:[#allocation7 + $0xb8] sm:$0xff]  ;;  %v1607_v40 = vld [vmem:[#allocation7 + $0xa8] sm:$0xff]  ;;  %v1606_v41 = vld [vmem:[#allocation7 + $0xa0] sm:$0xff] }
  0x2a   :  { %152 = vmatpush.msra.mxu0 %v135_v8  ;;  %322 = vmatpush.bf16.msra.mxu2 %v1600_v26  ;;  %v1605_v42 = vld [vmem:[#allocation7 + $0x98] sm:$0xff]  ;;  %v1604_v43 = vld [vmem:[#allocation7 + $0x90] sm:$0xff]  ;;  %v1696_v44 = vld [vmem:[#allocation8] ss:$0 sm:$0xff] }
  0x2b   :  { %239 = vmatpush.bf16.msra.mxu1 %v1590_v12  ;;  %406 = vmatpush.bf16.msra.mxu3 %v1609_v38  ;;  %v1603_v50 = vld [vmem:[#allocation7 + $0x88] sm:$0xff]  ;;  %v1602_v51 = vld [vmem:[#allocation7 + $0x80] sm:$0xff]  ;;  %v1617_v52 = vld [vmem:[#allocation7 + $0xf8] sm:$0xff] }
  0x2c   :  { %153 = vmatpush.msra.mxu0 %v134_v10  ;;  %v1616_v53 = vld [vmem:[#allocation7 + $0xf0] sm:$0xff]  ;;  %v1615_v54 = vld [vmem:[#allocation7 + $0xe8] sm:$0xff]  ;;  %v1614_v55 = vld [vmem:[#allocation7 + $0xe0] sm:$0xff] }
  0x2d   :  { %v1613_v56 = vld [vmem:[#allocation7 + $0xd8] sm:$0xff]  ;;  %v1612_v57 = vld [vmem:[#allocation7 + $0xd0] sm:$0xff]  ;;  %v1697_v58 = vld [vmem:[#allocation8 + $0x1] ss:$0 sm:$0xff] }
  0x2e   :  { %154 = vmatpush.msra.mxu0 %v133_v11  ;;  %323 = vmatpush.bf16.msra.mxu2 %v1599_v27  ;;  %v1611_v0 = vld [vmem:[#allocation7 + $0xc8] sm:$0xff]  ;;  %v1610_v1 = vld [vmem:[#allocation7 + $0xc0] sm:$0xff]  ;;  %v1625_v2 = vld [vmem:[#allocation7 + $0x138] sm:$0xff] }
  0x2f   :  { %240 = vmatpush.bf16.msra.mxu1 %v1589_v15  ;;  %407 = vmatpush.bf16.msra.mxu3 %v1608_v39  ;;  %v1624_v3 = vld [vmem:[#allocation7 + $0x130] sm:$0xff]  ;;  %v1623_v4 = vld [vmem:[#allocation7 + $0x128] sm:$0xff]  ;;  %v1622_v5 = vld [vmem:[#allocation7 + $0x120] sm:$0xff] }
  0x30   :  { %155 = vmatpush.msra.mxu0 %v132_v13  ;;  %v1621_v6 = vld [vmem:[#allocation7 + $0x118] sm:$0xff]  ;;  %v1620_v7 = vld [vmem:[#allocation7 + $0x110] sm:$0xff]  ;;  %v1698_v8 = vld [vmem:[#allocation8 + $0x2] ss:$0 sm:$0xff] }
  0x31   :  { %v1618_v15 = vld [vmem:[#allocation7 + $0x100] sm:$0xff] }
  0x32   :  { %156 = vmatpush.msra.mxu0 %v131_v14  ;;  %324 = vmatpush.bf16.msra.mxu2 %v1598_v28  ;;  %v1619_v14 = vld [vmem:[#allocation7 + $0x108] sm:$0xff] }
  0x33   :  { %241 = vmatpush.bf16.msra.mxu1 %v1588_v18  ;;  %408 = vmatpush.bf16.msra.mxu3 %v1607_v40  ;;  %v1631_v18 = vld [vmem:[#allocation7 + $0x168] sm:$0xff] }
  0x34   :  { %157 = vmatpush.msra.mxu0 %v130_v16  ;;  %v1633_v16 = vld [vmem:[#allocation7 + $0x178] sm:$0xff]  ;;  %v1627_v28 = vld [vmem:[#allocation7 + $0x148] sm:$0xff] }
  0x36   :  { %158 = vmatpush.msra.mxu0 %v129_v17  ;;  %325 = vmatpush.bf16.msra.mxu2 %v1597_v29  ;;  %v1632_v17 = vld [vmem:[#allocation7 + $0x170] sm:$0xff]  ;;  %v1626_v29 = vld [vmem:[#allocation7 + $0x140] sm:$0xff] }
  0x37   :  { %242 = vmatpush.bf16.msra.mxu1 %v1587_v23  ;;  %409 = vmatpush.bf16.msra.mxu3 %v1606_v41 }
  0x38   :  { %159 = vmatpush.msra.mxu0 %v128_v19  ;;  %v1630_v19 = vld [vmem:[#allocation7 + $0x160] sm:$0xff] }
  0x3a   :  { %160 = vmatpush.msra.mxu0 %v127_v20  ;;  %326 = vmatpush.bf16.msra.mxu2 %v1596_v30  ;;  %v1629_v20 = vld [vmem:[#allocation7 + $0x158] sm:$0xff] }
  0x3b   :  { %243 = vmatpush.bf16.msra.mxu1 %v1586_v24  ;;  %410 = vmatpush.bf16.msra.mxu3 %v1605_v42  ;;  %v1641_v30 = vld [vmem:[#allocation7 + $0x1b8] sm:$0xff]  ;;  %v1635_v42 = vld [vmem:[#allocation7 + $0x188] sm:$0xff] }
  0x3c   :  { %161 = vmatpush.msra.mxu0 %v126_v21  ;;  %v1628_v21 = vld [vmem:[#allocation7 + $0x150] sm:$0xff] }
  0x3d   :  { %162 = vmatmul.f32.vlgmr.msra.gmra.mxu0 %v125_v22  ;;  %v1699_v22 = vld [vmem:[#allocation8 + $0x3] ss:$0 sm:$0xff] }
  0x3e   :  { %327 = vmatpush.bf16.msra.mxu2 %v1595_v36  ;;  %491 = vmatpush.bf16.msrb.mxu0 %v1617_v52  ;;  %v1700_v36 = vld [vmem:[#allocation8 + $0x4] ss:$0 sm:$0xff] }
  0x3f   :  { %411 = vmatpush.bf16.msra.mxu3 %v1604_v43  ;;  %576 = vmatpush.bf16.msrb.mxu1 %v1625_v2  ;;  %v1634_v43 = vld [vmem:[#allocation7 + $0x180] sm:$0xff] }
  0x42   :  { %328 = vmatpush.bf16.msra.mxu2 %v1594_v37  ;;  %492 = vmatpush.bf16.msrb.mxu0 %v1616_v53 }
  0x43   :  { %412 = vmatpush.bf16.msra.mxu3 %v1603_v50  ;;  %577 = vmatpush.bf16.msrb.mxu1 %v1624_v3  ;;  %v1701_v50 = vld [vmem:[#allocation8 + $0x5] ss:$0 sm:$0xff] }
  0x46   :  { %493 = vmatpush.bf16.msrb.mxu0 %v1615_v54  ;;  %661 = vmatpush.bf16.msrb.mxu2 %v1633_v16 }
  0x47   :  { %413 = vmatpush.bf16.msra.mxu3 %v1602_v51  ;;  %578 = vmatpush.bf16.msrb.mxu1 %v1623_v4 }
  0x4a   :  { %494 = vmatpush.bf16.msrb.mxu0 %v1614_v55  ;;  %662 = vmatpush.bf16.msrb.mxu2 %v1632_v17 }
  0x4b   :  { %579 = vmatpush.bf16.msrb.mxu1 %v1622_v5  ;;  %746 = vmatpush.bf16.msrb.mxu3 %v1641_v30 }
  0x4e   :  { %495 = vmatpush.bf16.msrb.mxu0 %v1613_v56  ;;  %663 = vmatpush.bf16.msrb.mxu2 %v1631_v18  ;;  %v1643_v56 = vld [vmem:[#allocation7 + $0x1c8] sm:$0xff] }
  0x4f   :  { %580 = vmatpush.bf16.msrb.mxu1 %v1621_v6  ;;  %v1651_v6 = vld [vmem:[#allocation7 + $0x208] sm:$0xff] }
  0x52   :  { %496 = vmatpush.bf16.msrb.mxu0 %v1612_v57  ;;  %664 = vmatpush.bf16.msrb.mxu2 %v1630_v19  ;;  %v1642_v57 = vld [vmem:[#allocation7 + $0x1c0] sm:$0xff] }
  0x53   :  { %581 = vmatpush.bf16.msrb.mxu1 %v1620_v7  ;;  %v1650_v7 = vld [vmem:[#allocation7 + $0x200] sm:$0xff] }
  0x56   :  { %497 = vmatpush.bf16.msrb.mxu0 %v1611_v0  ;;  %665 = vmatpush.bf16.msrb.mxu2 %v1629_v20  ;;  %v1702_v0 = vld [vmem:[#allocation8 + $0x6] ss:$0 sm:$0xff]  ;;  %v1659_v20 = vld [vmem:[#allocation7 + $0x248] sm:$0xff] }
  0x57   :  { %582 = vmatpush.bf16.msrb.mxu1 %v1619_v14  ;;  %v1703_v14 = vld [vmem:[#allocation8 + $0x7] ss:$0 sm:$0xff] }
  0x5a   :  { %498 = vmatpush.bf16.msrb.mxu0 %v1610_v1  ;;  %666 = vmatpush.bf16.msrb.mxu2 %v1628_v21  ;;  %v1658_v21 = vld [vmem:[#allocation7 + $0x240] sm:$0xff] }
  0x5b   :  { %583 = vmatpush.bf16.msrb.mxu1 %v1618_v15 }
  0x5e   :  { %667 = vmatpush.bf16.msrb.mxu2 %v1627_v28  ;;  %v1704_v28 = vld [vmem:[#allocation8 + $0x8] ss:$0 sm:$0xff] }
  0x62   :  { %668 = vmatpush.bf16.msrb.mxu2 %v1626_v29 }
  0xba   :  { %v163_v32 = vpop.f32.mrf.mxu0 }
  0xbb   :  { %v164_v33 = vadd.f32 %v1695_v31, %v163_v32  ;;  %v1640_v31 = vld [vmem:[#allocation7 + $0x1b0] sm:$0xff]  ;;  %v1639_v32 = vld [vmem:[#allocation7 + $0x1a8] sm:$0xff] }
  0xbc   :  { %747 = vmatpush.bf16.msrb.mxu3 %v1640_v31 }
  0xbd   :  { %v166_v34 = vmax.f32 %v164_v33, 0.0  ;;  %v1638_v33 = vld [vmem:[#allocation7 + $0x1a0] sm:$0xff] }
  0xbf   :  { %v167_v35 = vpack.c.bf16 %v166_v34, %v166_v34  ;;  %v1637_v34 = vld [vmem:[#allocation7 + $0x198] sm:$0xff] }
  0xc0   :  { %748 = vmatpush.bf16.msrb.mxu3 %v1639_v32 }
  0xc1   :  { %244 = vmatmul.bf16.vlgmr.msra.gmra.mxu1 %v167_v35  ;;  %v1636_v35 = vld [vmem:[#allocation7 + $0x190] sm:$0xff] }
  0xc4   :  { %749 = vmatpush.bf16.msrb.mxu3 %v1638_v33 }
  0xc8   :  { %750 = vmatpush.bf16.msrb.mxu3 %v1637_v34  ;;  %v1667_v34 = vld [vmem:[#allocation10 + $0x8] sm:$0xff] }
  0xcc   :  { %751 = vmatpush.bf16.msrb.mxu3 %v1636_v35  ;;  %v1666_v35 = vld [vmem:[#allocation10] sm:$0xff] }
  0xd0   :  { %752 = vmatpush.bf16.msrb.mxu3 %v1635_v42  ;;  %v1705_v42 = vld [vmem:[#allocation8 + $0x9] ss:$0 sm:$0xff] }
  0xd4   :  { %753 = vmatpush.bf16.msrb.mxu3 %v1634_v43 }
 0x13e   :  { %v245_v45 = vpop.f32.mrf.mxu1 }
 0x13f   :  { %v246_v46 = vadd.f32 %v1696_v44, %v245_v45  ;;  %v1649_v44 = vld [vmem:[#allocation7 + $0x1f8] sm:$0xff]  ;;  %v1648_v45 = vld [vmem:[#allocation7 + $0x1f0] sm:$0xff] }
 0x140   :  { %831 = vmatpush.bf16.msra.mxu0 %v1649_v44 }
 0x141   :  { %v249_v47 = vmax.f32 %v246_v46, 0.0  ;;  %v1647_v46 = vld [vmem:[#allocation7 + $0x1e8] sm:$0xff] }
 0x143   :  { %v250_v48 = vpack.c.bf16 %v249_v47, %v249_v47  ;;  %v1646_v47 = vld [vmem:[#allocation7 + $0x1e0] sm:$0xff] }
 0x144   :  { %832 = vmatpush.bf16.msra.mxu0 %v1648_v45 }
 0x145   :  { %329 = vmatmul.bf16.vlgmr.msra.gmra.mxu2 %v250_v48  ;;  %v1645_v48 = vld [vmem:[#allocation7 + $0x1d8] sm:$0xff] }
 0x146   :  { %v247_v49 = vpop.f32.mrf.mxu1 }
 0x147   :  { %v1644_v49 = vld [vmem:[#allocation7 + $0x1d0] sm:$0xff] }
 0x148   :  { %833 = vmatpush.bf16.msra.mxu0 %v1647_v46 }
 0x14c   :  { %834 = vmatpush.bf16.msra.mxu0 %v1646_v47 }
 0x150   :  { %835 = vmatpush.bf16.msra.mxu0 %v1645_v48  ;;  %v1675_v48 = vld [vmem:[#allocation11 + $0x8] sm:$0xff] }
 0x154   :  { %836 = vmatpush.bf16.msra.mxu0 %v1644_v49  ;;  %v1674_v49 = vld [vmem:[#allocation11] sm:$0xff] }
 0x158   :  { %837 = vmatpush.bf16.msra.mxu0 %v1643_v56  ;;  %v1707_v56 = vld [vmem:[%s1987_s8] ss:$0 sm:$0xff] }
 0x15c   :  { %838 = vmatpush.bf16.msra.mxu0 %v1642_v57 }
 0x1c8   :  { %v330_v59 = vpop.f32.mrf.mxu2 }
 0x1c9   :  { %v331_v60 = vadd.f32 %v1697_v58, %v330_v59  ;;  %v1657_v58 = vld [vmem:[#allocation7 + $0x238] sm:$0xff]  ;;  %v1656_v59 = vld [vmem:[#allocation7 + $0x230] sm:$0xff] }
 0x1ca   :  { %916 = vmatpush.bf16.msra.mxu1 %v1657_v58 }
 0x1cb   :  { %v334_v61 = vmax.f32 %v331_v60, 0.0  ;;  %v1655_v60 = vld [vmem:[#allocation7 + $0x228] sm:$0xff] }
 0x1cd   :  { %v335_v62 = vpack.c.bf16 %v334_v61, %v334_v61  ;;  %v1654_v61 = vld [vmem:[#allocation7 + $0x220] sm:$0xff] }
 0x1ce   :  { %917 = vmatpush.bf16.msra.mxu1 %v1656_v59 }
 0x1cf   :  { %414 = vmatmul.bf16.vlgmr.msra.gmra.mxu3 %v335_v62  ;;  %v1653_v62 = vld [vmem:[#allocation7 + $0x218] sm:$0xff] }
 0x1d0   :  { %v332_v63 = vpop.f32.mrf.mxu2 }
 0x1d1   :  { %v1652_v63 = vld [vmem:[#allocation7 + $0x210] sm:$0xff] }
 0x1d2   :  { %918 = vmatpush.bf16.msra.mxu1 %v1655_v60 }
 0x1d6   :  { %919 = vmatpush.bf16.msra.mxu1 %v1654_v61 }
 0x1da   :  { %920 = vmatpush.bf16.msra.mxu1 %v1653_v62 }
 0x1de   :  { %921 = vmatpush.bf16.msra.mxu1 %v1652_v63 }
 0x1e2   :  { %922 = vmatpush.bf16.msra.mxu1 %v1651_v6 }
 0x1e6   :  { %923 = vmatpush.bf16.msra.mxu1 %v1650_v7 }
 0x252   :  { %v415_v9 = vpop.f32.mrf.mxu3 }
 0x253   :  { %v416_v10 = vadd.f32 %v1698_v8, %v415_v9  ;;  %v1665_v8 = vld [vmem:[#allocation7 + $0x278] sm:$0xff]  ;;  %v1664_v9 = vld [vmem:[#allocation7 + $0x270] sm:$0xff] }
 0x254   :  { %1001 = vmatpush.bf16.msra.mxu2 %v1665_v8 }
 0x255   :  { %v419_v11 = vmax.f32 %v416_v10, 0.0  ;;  %v1663_v10 = vld [vmem:[#allocation7 + $0x268] sm:$0xff] }
 0x257   :  { %v420_v12 = vpack.c.bf16 %v419_v11, %v419_v11  ;;  %v1662_v11 = vld [vmem:[#allocation7 + $0x260] sm:$0xff] }
 0x258   :  { %1002 = vmatpush.bf16.msra.mxu2 %v1664_v9 }
 0x259   :  { %499 = vmatmul.bf16.vlgmr.msrb.gmra.mxu0 %v420_v12  ;;  %v1661_v12 = vld [vmem:[#allocation7 + $0x258] sm:$0xff] }
 0x25a   :  { %v417_v13 = vpop.f32.mrf.mxu3 }
 0x25b   :  { %v1660_v13 = vld [vmem:[#allocation7 + $0x250] sm:$0xff] }
 0x25c   :  { %1003 = vmatpush.bf16.msra.mxu2 %v1663_v10 }
 0x260   :  { %1004 = vmatpush.bf16.msra.mxu2 %v1662_v11 }
 0x264   :  { %1005 = vmatpush.bf16.msra.mxu2 %v1661_v12 }
 0x268   :  { %1006 = vmatpush.bf16.msra.mxu2 %v1660_v13 }
 0x26c   :  { %1007 = vmatpush.bf16.msra.mxu2 %v1659_v20 }
 0x270   :  { %1008 = vmatpush.bf16.msra.mxu2 %v1658_v21 }
 0x2d6   :  { %v500_v23 = vpop.f32.mrf.mxu0 }
 0x2d7   :  { %v501_v24 = vadd.f32 %v1699_v22, %v500_v23  ;;  %v1673_v22 = vld [vmem:[#allocation10 + $0x38] sm:$0xff]  ;;  %v1672_v23 = vld [vmem:[#allocation10 + $0x30] sm:$0xff] }
 0x2d8   :  { %1084 = vmatpush.bf16.msra.mxu3 %v1673_v22 }
 0x2d9   :  { %v504_v25 = vmax.f32 %v501_v24, 0.0  ;;  %v1671_v24 = vld [vmem:[#allocation10 + $0x28] sm:$0xff] }
 0x2db   :  { %v505_v26 = vpack.c.bf16 %v504_v25, %v504_v25  ;;  %v1670_v25 = vld [vmem:[#allocation10 + $0x20] sm:$0xff] }
 0x2dc   :  { %1085 = vmatpush.bf16.msra.mxu3 %v1672_v23 }
 0x2dd   :  { %584 = vmatmul.bf16.vlgmr.msrb.gmra.mxu1 %v505_v26  ;;  %v1669_v26 = vld [vmem:[#allocation10 + $0x18] sm:$0xff] }
 0x2de   :  { %v502_v27 = vpop.f32.mrf.mxu0 }
 0x2df   :  { %v1668_v27 = vld [vmem:[#allocation10 + $0x10] sm:$0xff] }
 0x2e0   :  { %1086 = vmatpush.bf16.msra.mxu3 %v1671_v24 }
 0x2e4   :  { %1087 = vmatpush.bf16.msra.mxu3 %v1670_v25 }
 0x2e8   :  { %1088 = vmatpush.bf16.msra.mxu3 %v1669_v26 }
 0x2ec   :  { %1089 = vmatpush.bf16.msra.mxu3 %v1668_v27 }
 0x2f0   :  { %1090 = vmatpush.bf16.msra.mxu3 %v1667_v34 }
 0x2f4   :  { %1091 = vmatpush.bf16.msra.mxu3 %v1666_v35 }
 0x35a   :  { %v585_v37 = vpop.f32.mrf.mxu1 }
 0x35b   :  { %v586_v38 = vadd.f32 %v1700_v36, %v585_v37  ;;  %v1681_v36 = vld [vmem:[#allocation11 + $0x38] sm:$0xff]  ;;  %v1680_v37 = vld [vmem:[#allocation11 + $0x30] sm:$0xff] }
 0x35c   :  { %1167 = vmatpush.bf16.msrb.mxu0 %v1681_v36 }
 0x35d   :  { %v589_v39 = vmax.f32 %v586_v38, 0.0  ;;  %v1679_v38 = vld [vmem:[#allocation11 + $0x28] sm:$0xff] }
 0x35f   :  { %v590_v40 = vpack.c.bf16 %v589_v39, %v589_v39  ;;  %v1678_v39 = vld [vmem:[#allocation11 + $0x20] sm:$0xff] }
 0x360   :  { %1168 = vmatpush.bf16.msrb.mxu0 %v1680_v37 }
 0x361   :  { %669 = vmatmul.bf16.vlgmr.msrb.gmra.mxu2 %v590_v40  ;;  %v1677_v40 = vld [vmem:[#allocation11 + $0x18] sm:$0xff] }
 0x362   :  { %v587_v41 = vpop.f32.mrf.mxu1 }
 0x363   :  { %v1676_v41 = vld [vmem:[#allocation11 + $0x10] sm:$0xff] }
 0x364   :  { %1169 = vmatpush.bf16.msrb.mxu0 %v1679_v38 }
 0x368   :  { %1170 = vmatpush.bf16.msrb.mxu0 %v1678_v39 }
 0x36c   :  { %1171 = vmatpush.bf16.msrb.mxu0 %v1677_v40 }
 0x370   :  { %1172 = vmatpush.bf16.msrb.mxu0 %v1676_v41 }
 0x374   :  { %1173 = vmatpush.bf16.msrb.mxu0 %v1675_v48 }
 0x378   :  { %1174 = vmatpush.bf16.msrb.mxu0 %v1674_v49 }
 0x3e4   :  { %v670_v51 = vpop.f32.mrf.mxu2 }
 0x3e5   :  { %v671_v52 = vadd.f32 %v1701_v50, %v670_v51  ;;  %v1706_v50 = vld [vmem:[%s1985_s6] ss:$0 sm:$0xff] }
 0x3e7   :  { %v674_v53 = vmax.f32 %v671_v52, 0.0 }
 0x3e9   :  { %v675_v54 = vpack.c.bf16 %v674_v53, %v674_v53 }
 0x3eb   :  { %754 = vmatmul.bf16.vlgmr.msrb.gmra.mxu3 %v675_v54 }
 0x3ec   :  { %v672_v55 = vpop.f32.mrf.mxu2 }
 0x46e   :  { %v755_v1 = vpop.f32.mrf.mxu3 }
 0x46f   :  { %v756_v2 = vadd.f32 %v1702_v0, %v755_v1 }
 0x471   :  { %v759_v3 = vmax.f32 %v756_v2, 0.0 }
 0x473   :  { %v760_v4 = vpack.c.bf16 %v759_v3, %v759_v3 }
 0x475   :  { %839 = vmatmul.bf16.vlgmr.msra.gmra.mxu0 %v760_v4 }
 0x476   :  { %v757_v5 = vpop.f32.mrf.mxu3 }
 0x4f2   :  { %v840_v15 = vpop.f32.mrf.mxu0 }
 0x4f3   :  { %v841_v16 = vadd.f32 %v1703_v14, %v840_v15 }
 0x4f5   :  { %v844_v17 = vmax.f32 %v841_v16, 0.0 }
 0x4f7   :  { %v845_v18 = vpack.c.bf16 %v844_v17, %v844_v17 }
 0x4f9   :  { %924 = vmatmul.bf16.vlgmr.msra.gmra.mxu1 %v845_v18 }
 0x4fa   :  { %v842_v19 = vpop.f32.mrf.mxu0 }
 0x576   :  { %v925_v29 = vpop.f32.mrf.mxu1 }
 0x577   :  { %v926_v30 = vadd.f32 %v1704_v28, %v925_v29 }
 0x579   :  { %v929_v31 = vmax.f32 %v926_v30, 0.0 }
 0x57b   :  { %v930_v32 = vpack.c.bf16 %v929_v31, %v929_v31 }
 0x57d   :  { %1009 = vmatmul.bf16.vlgmr.msra.gmra.mxu2 %v930_v32 }
 0x57e   :  { %v927_v33 = vpop.f32.mrf.mxu1 }
 0x600   :  { %v1010_v43 = vpop.f32.mrf.mxu2 }
 0x601   :  { %v1011_v44 = vadd.f32 %v1705_v42, %v1010_v43 }
 0x603   :  { %v1014_v45 = vmax.f32 %v1011_v44, 0.0 }
 0x605   :  { %v1015_v46 = vpack.c.bf16 %v1014_v45, %v1014_v45 }
 0x607   :  { %1092 = vmatmul.bf16.vlgmr.msra.gmra.mxu3 %v1015_v46 }
 0x608   :  { %v1012_v47 = vpop.f32.mrf.mxu2 }
 0x68a   :  { %v1093_v51 = vpop.f32.mrf.mxu3 }
 0x68b   :  { %v1094_v52 = vadd.f32 %v1706_v50, %v1093_v51 }
 0x68d   :  { %v1097_v53 = vmax.f32 %v1094_v52, 0.0 }
 0x68f   :  { %v1098_v54 = vpack.c.bf16 %v1097_v53, %v1097_v53 }
 0x691   :  { %1175 = vmatmul.bf16.vlgmr.msrb.gmra.mxu0 %v1098_v54 }
 0x692   :  { %v1095_v55 = vpop.f32.mrf.mxu3 }
 0x70e   :  { %v1176_v57 = vpop.f32.mrf.mxu0 }
 0x70f   :  { %v1177_v58 = vadd.f32 %v1707_v56, %v1176_v57 }
 0x711   :  { %v1180_v59 = vpack.c.bf16 %v1177_v58, %v1177_v58 }
 0x713   :  { %1181 = vst [vmem:[#allocation13] sm:$0xf] %v1180_v59 }
 0x714   :  { %1192 = dma.vmem_to_hbm [thread:$0]  %s1188_s23, 64, %s1190_s26, [#allocation4]  }
 0x716   :  { %v1178_v60 = vpop.f32.mrf.mxu0 }
 0x717   :  { %1884 = dma.done.wait [#allocation4], 64  }
 0x718   :  { %1885 = vsyncadd [#allocation4], 4294967232 }
 0x719   :  { %1197 = vsyncpa [#allocation3], 1 }
 0x71a   :  { %1198 = vsyncpa [#allocation6], 1 }
 0x71b   :  { %1199 = vsyncpa [#allocation9], 1 }
 0x71c   :  { %1200 = vsyncpa [#allocation12], 1 }
 0x71d   :  { %1201 = vsyncpa [#allocation4], 1 }

</bundles_post_ra>
